<compile_context>
chip_gen: v6e
topology: v6e:2x2x1
jax: 0.10.0
libtpu: 0.0.40
codegen_flags: <defaults>
</compile_context>

<pallas_src>
import functools
import math

import jax
import jax.numpy as jnp
from jax import lax
from jax.experimental import pallas as pl
from jax.experimental.pallas import tpu as pltpu

EPS = 1e-6  # RMSNorm epsilon


# ---------------------------------------------------------------------------
# pltpu.roll rotation-direction probe (one trivial kernel, cached per width).
# Keeps the RoPE pair-shift correct across JAX versions regardless of the roll
# convention.
# ---------------------------------------------------------------------------
def _roll_probe_kernel(x_ref, o_ref):
    o_ref[...] = pltpu.roll(x_ref[...], 1, axis=1)


@functools.lru_cache(maxsize=None)
def _roll_shifts(width):
    """Returns (shift_next, shift_prev) so roll(z, shift_next)[j] == z[j+1], etc."""
    probe = jnp.tile(jnp.arange(width, dtype=jnp.float32)[None, :], (8, 1))
    rolled = pl.pallas_call(
        _roll_probe_kernel,
        out_shape=jax.ShapeDtypeStruct((8, width), jnp.float32),
    )(probe)
    if int(rolled[0, 1]) == 0:   # jnp.roll convention: values move toward higher lanes
        return width - 1, 1
    return 1, width - 1


# ---------------------------------------------------------------------------
# Kernel: whole decoder layer for ONE batch element (grid step).
# ---------------------------------------------------------------------------
def decoder_layer_kernel(
    x_ref,      # (1, T, D) f32  this batch element's activations
    wqkv_ref,   # (D, 6D)   bf16 fused [q0|k0|q1|k1|v0|v1] projection
    wog_ref,    # (2D, D)   bf16 fused [wo0@Wg[:D] ; wo1@Wg[D:]] out-projection
    w12_ref,    # (D, 2D)   bf16 fused [w1|w2] SwiGLU projection
    w3l_ref,    # (D, D)    bf16 fused (w3 @ w_linear) FFN epilogue
    bl_ref,     # (1, D)    f32  final linear bias
    gm1_ref,    # (1, D)    f32  RMSNorm-1 weight
    gm2_ref,    # (1, D)    f32  RMSNorm-2 weight
    c1_ref,     # (T, 4D)   f32  RoPE coeff on z[j]
    cn_ref,     # (T, 4D)   f32  RoPE coeff on z[j+1] (nonzero at even lanes)
    cp_ref,     # (T, 4D)   f32  RoPE coeff on z[j-1] (nonzero at odd lanes)
    out_ref,    # (1, T, D) f32
    *,
    shift_next,
    shift_prev,
):
    f32, bf16 = jnp.float32, jnp.bfloat16
    x = x_ref[0]                                   # (T, D) f32
    T, D = x.shape
    inv_sqrt_d = jnp.float32(1.0 / math.sqrt(D))

    def rmsnorm(h, gamma):
        ms = jnp.mean(h * h, axis=-1, keepdims=True)
        return h * lax.rsqrt(ms + EPS) * gamma

    # ---- fused QKV projection: one wide MXU matmul (bf16 in, f32 acc) ----
    qkv = jnp.dot(x.astype(bf16), wqkv_ref[...], preferred_element_type=f32)   # (T, 6D)

    # ---- RoPE on [q0|k0|q1|k1]: two XLU lane rolls + f32 coefficient tables ----
    #   even lane j: cos_t * (z[j] + z[j+1]);  odd lane j: sin_t * (z[j] - z[j-1])
    # Wrapped / cross-segment lanes always carry a zero coefficient -> fused roll exact.
    qk = qkv[:, :4 * D]                                                          # (T, 4D)
    roped = (c1_ref[...] * qk
             + cn_ref[...] * pltpu.roll(qk, shift_next, axis=1)
             + cp_ref[...] * pltpu.roll(qk, shift_prev, axis=1))

    # ---- causal additive mask generated in-kernel (no O(T^2) streamed operand) ----
    row = lax.broadcasted_iota(jnp.int32, (T, T), 0)
    col = lax.broadcasted_iota(jnp.int32, (T, T), 1)
    bias = jnp.where(col <= row, 0.0, -1e30).astype(f32)

    # TODO(synk): for T beyond ~1-2k switch attend() to a q-tile x kv-tile online-softmax
    #             (flash) loop with VMEM accumulators instead of full (T, T) scores.
    def attend(g):
        rq = roped[:, 2 * g * D:(2 * g + 1) * D]                                 # (T, D)
        rk = roped[:, (2 * g + 1) * D:(2 * g + 2) * D]                           # (T, D)
        v = qkv[:, (4 + g) * D:(5 + g) * D]                                      # (T, D)
        logits = lax.dot_general(rq.astype(bf16), rk.astype(bf16),
                                 (((1,), (1,)), ((), ())),
                                 preferred_element_type=f32)                     # (T, T)
        w = logits * inv_sqrt_d + bias                                           # f32
        m = jnp.max(w, axis=-1, keepdims=True)
        p = jnp.exp(w - m)
        s = jnp.sum(p, axis=-1, keepdims=True)
        att = jnp.dot(p.astype(bf16), v.astype(bf16), preferred_element_type=f32)
        return att * pl.reciprocal(s, approx=False)   # exact reciprocal (EUP slot)

    # Single fused K=2D out-projection (per-group wo and GQA projection pre-folded).
    attn = jnp.dot(jnp.concatenate([attend(0), attend(1)], axis=-1).astype(bf16),
                   wog_ref[...], preferred_element_type=f32)

    h = rmsnorm(x + attn, gm1_ref[...])

    # ---- SwiGLU FFN with fused [w1|w2] and fused (w3 @ w_linear) weights ----
    h12 = jnp.dot(h.astype(bf16), w12_ref[...], preferred_element_type=f32)      # (T, 2D)
    hw1, hw2 = h12[:, :D], h12[:, D:]
    ff = jnp.dot((hw1 * jax.nn.sigmoid(hw1) * hw2).astype(bf16), w3l_ref[...],
                 preferred_element_type=f32) + bl_ref[...]

    out_ref[0] = rmsnorm(h + ff, gm2_ref[...])


# ---------------------------------------------------------------------------
# One-time host-side prep (weight fusion + RoPE tables). Runs once, not per call.
# ---------------------------------------------------------------------------
def prepare_decoder_layer(params, T, D):
    (wq0, wk0, wv0, wo0, wq1, wk1, wv1, wo1,
     wg, w1, w2, w3, wl, bl, gm1, gm2) = params
    f32, bf16 = jnp.float32, jnp.bfloat16
    assert D % 2 == 0

    # Exact linear-algebra rewrites in f32, then cast the MXU operand slabs to bf16
    # (halves weight DMA/VMEM; f32 accumulation is retained inside the kernel).
    w_qkv = jnp.concatenate([wq0, wk0, wq1, wk1, wv0, wv1], axis=1).astype(bf16)  # (D,6D)
    w_og = jnp.concatenate([wo0 @ wg[:D], wo1 @ wg[D:]], axis=0).astype(bf16)     # (2D,D)
    w_12 = jnp.concatenate([w1, w2], axis=1).astype(bf16)                          # (D,2D)
    w_3l = (w3 @ wl).astype(bf16)                                                   # (D,D)

    # RoPE coefficient tables (reference's position-dependent theta): (T, 4D), tiled only
    # over the 4 roped segments [q0|k0|q1|k1] — no batch replication.
    pos = jnp.arange(T, dtype=f32)[:, None]                                         # (T,1)
    theta = 10000.0 ** (-2.0 * (pos - 1.0) / D)
    ang = pos * theta
    cos, sin = jnp.cos(ang), jnp.sin(ang)
    even = (jnp.arange(D) % 2) == 0                                                  # (D,)
    c1 = jnp.where(even, cos, sin)        # coeff on z[j]
    cn = jnp.where(even, cos, 0.0)        # coeff on z[j+1]
    cp = jnp.where(even, 0.0, -sin)       # coeff on z[j-1]
    tile4 = lambda c: jnp.tile(c.astype(f32), (1, 4))                               # (T,4D)

    return (w_qkv, w_og, w_12, w_3l,
            bl.astype(f32), gm1.astype(f32), gm2.astype(f32),
            tile4(c1), tile4(cn), tile4(cp))


# ---------------------------------------------------------------------------
# Forward wrapper: batch-parallel grid, weights resident via constant index_maps.
# ---------------------------------------------------------------------------
def decoder_layer(x, fused):
    (w_qkv, w_og, w_12, w_3l, bl, gm1, gm2, c1, cn, cp) = fused
    B, T, D = x.shape
    assert c1.shape == (T, 4 * D)

    shift_next, shift_prev = _roll_shifts(4 * D)   # cached probe (one-time)
    kernel = functools.partial(decoder_layer_kernel,
                               shift_next=shift_next, shift_prev=shift_prev)

    const = lambda b: (0, 0)        # weight / table blocks: DMA'd once, stay resident
    per_b = lambda b: (b, 0, 0)     # per-batch activation blocks

    # VMEM budget: bf16 weight slabs + f32 tables + double-buffered activation blocks +
    # in-kernel intermediates, with margin; clamped under v7x's 64 MiB physical VMEM.
    est = (2 * (6 * D * D + 2 * D * D + 2 * D * D + D * D)      # bf16 weights
           + 4 * (3 * T * 4 * D + 3 * D)                        # f32 tables + vectors
           + 4 * 2 * 2 * (T * D)                                # x / out, double-buffered
           + 4 * (6 * T * D + 4 * T * D + 3 * T * T + 6 * T * D))  # intermediates
    vmem_limit = int(min(max(4 * est, 8 << 20), 48 << 20))

    return pl.pallas_call(
        kernel,
        out_shape=jax.ShapeDtypeStruct((B, T, D), jnp.float32),
        grid=(B,),
        in_specs=[
            pl.BlockSpec((1, T, D), per_b),        # x
            pl.BlockSpec((D, 6 * D), const),       # fused QKV
            pl.BlockSpec((2 * D, D), const),       # fused out-projection
            pl.BlockSpec((D, 2 * D), const),       # fused SwiGLU
            pl.BlockSpec((D, D), const),           # fused FFN epilogue
            pl.BlockSpec((1, D), const),           # final linear bias
            pl.BlockSpec((1, D), const),           # RMSNorm-1 weight
            pl.BlockSpec((1, D), const),           # RMSNorm-2 weight
            pl.BlockSpec((T, 4 * D), const),       # RoPE c1
            pl.BlockSpec((T, 4 * D), const),       # RoPE cn
            pl.BlockSpec((T, 4 * D), const),       # RoPE cp
        ],
        out_specs=pl.BlockSpec((1, T, D), per_b),
        compiler_params=pltpu.CompilerParams(
            dimension_semantics=("parallel",),     # megacore-shard batch (v7x: 2 TCs)
            vmem_limit_bytes=vmem_limit,
        ),
    )(x, w_qkv, w_og, w_12, w_3l, bl, gm1, gm2, c1, cn, cp)


# ---------------------------------------------------------------------------
# Deterministic parameters + pure-JAX f32 reference for correctness checking.
# ---------------------------------------------------------------------------
def make_params(key, D):
    """Module weights (PyTorch nn.Linear-style uniform bounds), stored (in, out)."""
    ks = iter(jax.random.split(key, 16))

    def lin(fan_in, fan_out):
        b = 1.0 / math.sqrt(fan_in)
        return jax.random.uniform(next(ks), (fan_in, fan_out), jnp.float32, -b, b)

    wq0, wk0, wv0, wo0 = lin(D, D), lin(D, D), lin(D, D), lin(D, D)
    wq1, wk1, wv1, wo1 = lin(D, D), lin(D, D), lin(D, D), lin(D, D)
    wg = lin(2 * D, D)                       # GQA projection (2D -> D, bias-free)
    w1, w2, w3 = lin(D, D), lin(D, D), lin(D, D)   # SwiGLU (bias-free)
    wl = lin(D, D)                           # final FFN linear (biased)
    bb = 1.0 / math.sqrt(D)
    bl = jax.random.uniform(next(ks), (1, D), jnp.float32, -bb, bb)
    gm1 = jnp.ones((1, D), jnp.float32)      # RMSNorm weights
    gm2 = jnp.ones((1, D), jnp.float32)
    return (wq0, wk0, wv0, wo0, wq1, wk1, wv1, wo1,
            wg, w1, w2, w3, wl, bl, gm1, gm2)


def ref_forward(x, params):
    """Pure-JAX f32 reference using the reference's full (T, D, D) rotary matrix."""
    (wq0, wk0, wv0, wo0, wq1, wk1, wv1, wo1,
     wg, w1, w2, w3, wl, bl, gm1, gm2) = params
    B, T, D = x.shape

    def rmsnorm(h, g):
        return h * lax.rsqrt(jnp.mean(h * h, -1, keepdims=True) + EPS) * g

    pos = jnp.arange(T, dtype=jnp.float32)[:, None]
    theta = 10000.0 ** (-2.0 * (pos - 1.0) / D)
    ang = pos * theta
    cos, sin = jnp.cos(ang), jnp.sin(ang)
    even = jnp.arange(0, D, 2)
    odd = even + 1
    M = jnp.zeros((T, D, D), jnp.float32)
    M = M.at[:, even, even].set(cos).at[:, odd, odd].set(sin)
    M = M.at[:, odd, even].set(-sin).at[:, even, odd].set(cos)

    def rope(z):
        return jnp.einsum('tij,btj->bti', M, z)

    mask = jnp.tril(jnp.ones((T, T), bool))

    def mqa(wq, wk, wv, wo):
        q, k, v = x @ wq, x @ wk, x @ wv
        rq, rk = rope(q), rope(k)
        w = jnp.einsum('btd,bsd->bts', rq, rk)
        w = jnp.where(mask, w, -jnp.inf) / jnp.sqrt(jnp.float32(D))
        p = jax.nn.softmax(w, axis=-1)
        return (p @ v) @ wo

    attn = jnp.concatenate([mqa(wq0, wk0, wv0, wo0),
                            mqa(wq1, wk1, wv1, wo1)], axis=-1) @ wg
    h = rmsnorm(x + attn, gm1)
    hw1, hw2 = h @ w1, h @ w2
    ff = ((hw1 * jax.nn.sigmoid(hw1)) * hw2) @ w3
    ff = ff @ wl + bl
    return rmsnorm(h + ff, gm2)


if __name__ == "__main__":
    B, T, D = 2, 8, 32   # small: batch=2, block_size(seq)=8, embeddings_dims=32
    key = jax.random.PRNGKey(0)
    kx, kp = jax.random.split(key)
    x = jax.random.normal(kx, (B, T, D), dtype=jnp.float32)
    params = make_params(kp, D)

    fused = prepare_decoder_layer(params, T, D)           # one-time host prep
    out = jax.block_until_ready(decoder_layer(x, fused))

    ref = ref_forward(x, params)
    assert out.shape == (B, T, D)
    max_err = float(jnp.max(jnp.abs(out - ref)))
    # Budget covers the deliberate bf16 MXU-operand cast (weight slabs + dot inputs);
    # softmax / mask / RMSNorm / residual math stays f32 and outputs are RMS-normalized,
    # so O(1) structural errors would still be caught.
    assert jnp.allclose(out, ref, atol=6e-2, rtol=6e-2), max_err
    print("KERNEL_OK")
</pallas_src>

<mosaic_0001>
module attributes {stable_mosaic.version = 11 : i64} {
  func.func @_roll_probe_kernel(%arg0: memref<8x128xf32, #tpu.memory_space<vmem>>, %arg1: memref<8x128xf32, #tpu.memory_space<vmem>>) attributes {dimension_semantics = [], scalar_prefetch = 0 : i64, scratch_operands = 0 : i64, tpu.core_type = #tpu.core_type<tc>} {
    %c0 = arith.constant 0 : index
    %c0_0 = arith.constant 0 : index
    %0 = vector.load %arg0[%c0, %c0_0] : memref<8x128xf32, #tpu.memory_space<vmem>>, vector<8x128xf32>
    %c1_i32 = arith.constant 1 : i32
    %1 = tpu.dynamic_rotate %0 by %c1_i32 dim 1 : vector<8x128xf32>, i32 -> vector<8x128xf32>
    %c0_1 = arith.constant 0 : index
    %c0_2 = arith.constant 0 : index
    %2 = vector.load %arg1[%c0_1, %c0_2] : memref<8x128xf32, #tpu.memory_space<vmem>>, vector<8x128xf32>
    tpu.vector_store %arg1[%c0_1, %c0_2], %1 {strides = array<i32>} : memref<8x128xf32, #tpu.memory_space<vmem>>, vector<8x128xf32>,
    return
  }
}

</mosaic_0001>

<bundles_post_ra>
// kernel: tpu_custom_call.1
= control target key start
LH: loop header
LB: loop body
LE: loop exit
PB: predicated region body
PF: predicated region fallthrough
CT: control target
= control target key end

     0   :  { %6 = vsyncpa [#allocation3], 0  ;;  %s106_s0 = inlined_call_operand.hbm [shape: f32[8,128], index: 0, kind: input, shape index: {}]   ;;  %s107_s1 = inlined_call_operand.hbm [shape: f32[8,128], index: 1, kind: output, shape index: {}]  }
   0x1   :  { %7 = vsyncpa [#allocation4], 0  ;;  %s87_s6 = smov [#allocation2]  }
   0x2   :  { %s14_s7 = sshll.u32 %s87_s6, 4  ;;  %s15_s7 = int_to_ptr.vmem [resolvable:$true] %s14_s7 }
   0x3   :  { %s51_s8 = scalar_lea.vmem %s15_s7, 128  ;;  %p56_p1 = scmp.lt.s32.totalorder %s15_s7, %s15_s7 }
   0x4   :  { %p52_p0 = scmp.ne.s32.totalorder %s15_s7, %s51_s8  ;;  %p57_p2 = scmp.lt.s32.totalorder %s51_s8, %s51_s8 }
   0x6   :  { %p58_p3 = por %p57_p2, %p56_p1 }
   0x8   :  { %p59_p4 = pnand %p58_p3, %p52_p0 }
   0xa   :  { %62 = shalt.err (!%p59_p4)
}
   0xb   :  { %17 = dma.hbm_to_vmem [thread:$0]  %s106_s0, 128, %s15_s7, [#allocation3]  }
   0xc   :  { %83 = dma.done.wait [#allocation3], 128  }
   0xd   :  { %84 = vsyncadd [#allocation3], 4294967168  ;;  %v21_v0 = vld [vmem:[#allocation2] sm:$0xff]  ;;  %s88_s11 = smov 1   ;;  %s89_s12 = smov [#allocation5]  }
   0xe   :  { %22 = vrot.lane.b32.xlu0 %v21_v0, %s88_s11  ;;  %s31_s13 = sshll.u32 %s89_s12, 4  ;;  %s32_s13 = int_to_ptr.vmem [resolvable:$true] %s31_s13 }
   0xf   :  { %s63_s14 = scalar_lea.vmem %s32_s13, 128  ;;  %p68_p6 = scmp.lt.s32.totalorder %s32_s13, %s32_s13 }
  0x10   :  { %p64_p5 = scmp.ne.s32.totalorder %s32_s13, %s63_s14  ;;  %p69_p7 = scmp.lt.s32.totalorder %s63_s14, %s63_s14 }
  0x12   :  { %p70_p8 = por %p69_p7, %p68_p6 }
  0x14   :  { %p71_p9 = pnand %p70_p8, %p64_p5 }
  0x80   :  { %v23_v1 = vpop.permute.xlu0 %22 }
  0x81   :  { %24 = vst [vmem:[#allocation5] sm:$0xff] %v23_v1 }
  0x82   :  { %74 = shalt.err (!%p71_p9)
}
  0x83   :  { %34 = dma.vmem_to_hbm [thread:$0]  %s32_s13, 128, %s107_s1, [#allocation4]  }
  0x84   :  { %85 = dma.done.wait [#allocation4], 128  }
  0x85   :  { %86 = vsyncadd [#allocation4], 4294967168 }
  0x86   :  { %38 = vsyncpa [#allocation3], 1 }
  0x87   :  { %39 = vsyncpa [#allocation4], 1 }

</bundles_post_ra>
